<compile_context>
chip_gen: v7x
topology: tpu7x:2x2x1
jax: 0.10.0
libtpu: 0.0.40
codegen_flags: <defaults>
</compile_context>

<pallas_src>
import functools

import jax
import jax.numpy as jnp
from jax.experimental import pallas as pl
from jax.experimental.pallas import tpu as pltpu


def _round_up(x, m):
    return (x + m - 1) // m * m


def _patch_embed_kernel(x_ref, w_ref, b_ref, o_ref):
    # x_ref: (TM, Kp) bf16 patch rows    w_ref: (Kp, Ep) bf16 (resident)
    # b_ref: (1, Ep) f32                 o_ref: (TM, Ep) out dtype
    acc = jnp.dot(x_ref[...], w_ref[...], preferred_element_type=jnp.float32)
    o_ref[...] = (acc + b_ref[...]).astype(o_ref.dtype)


def _vmem_budget():
    """Return (tile_budget_bytes, vmem_limit_bytes), generation-aware.

    v5e/v6e have 128 MiB physical VMEM -> generous headroom keeps TM in the
    512-1024 sweet spot for large E; v7x (64 MiB physical) or unknown chips
    get the conservative setting.
    """
    cap = None
    try:
        cap = getattr(pltpu.get_tpu_info(), "vmem_capacity_bytes", None)
    except Exception:
        cap = None
    if cap is not None and cap >= 100 * 1024 * 1024:   # v5e / v6e
        return 56 * 1024 * 1024, 80 * 1024 * 1024
    return 20 * 1024 * 1024, 32 * 1024 * 1024          # v7x / unknown


def _pick_tile_m(M, Kp, Ep, in_bytes, out_bytes, budget_bytes):
    """Pick the M tile.

    * Resident weight/bias are counted at 2x: the BlockSpec pipeline
      double-buffers even constant-index operands.
    * Small problems: one sublane-aligned tile covering all of M (no wasted
      MXU rows, no masked layout fixups beyond the tail).
    * Large problems: TM is a multiple of 256 and capped so the grid has at
      least 2 tiles, so v7x's two TensorCores split the "parallel" axis.
    """
    fixed = 2 * (Kp * Ep * in_bytes + Ep * 4)               # 2x-buffered weight + bias
    per_row = 2 * (Kp * in_bytes + Ep * out_bytes)          # 2x-buffered x & out rows
    tm = (budget_bytes - fixed) // max(per_row, 1)
    tm = min(max(tm, 128), 1024)                            # tile-sweep sweet-spot cap

    if M <= 256:
        return max(8, _round_up(M, 8))                      # single tile

    tm = min(tm, _round_up(pl.cdiv(M, 2), 256))             # >= 2 tiles for 2-TC split
    return (tm // 256) * 256 if tm >= 256 else 128


def patch_embed(x, weight, bias, patch_size, *,
                compute_dtype=jnp.bfloat16, out_dtype=None):
    """x: (B, C, H, W); weight: (E, C, p, p) [torch Conv2d layout]; bias: (E,).

    Returns (B, num_patches, E) in `out_dtype` (defaults to compute_dtype).
    """
    if out_dtype is None:
        out_dtype = compute_dtype

    B, C, H, W = x.shape
    E = weight.shape[0]
    p = patch_size
    gh, gw = H // p, W // p
    num_patches = gh * gw
    M = B * num_patches
    K = C * p * p

    Kp = _round_up(K, 128)
    Ep = _round_up(E, 128)
    in_bytes = jnp.dtype(compute_dtype).itemsize
    out_bytes = jnp.dtype(out_dtype).itemsize

    budget, vmem_limit = _vmem_budget()
    TM = _pick_tile_m(M, Kp, Ep, in_bytes, out_bytes, budget)
    grid = (pl.cdiv(M, TM),)   # no M padding: tail block is masked by Pallas

    # --- activation producer: cast + patch relayout + lane pad (one chain) ---
    # With allow_input_fusion on operand 0, XLA may consume this directly in
    # the kernel's input DMA instead of materializing a separate HBM array.
    # TODO(synk): the NCHW -> (M, K) relayout itself stays an XLA transpose; a
    # lane-efficient in-kernel fusion would need K contiguous in lanes, which
    # this small-p reorder cannot express as a Pallas block pattern.
    patches = x.astype(compute_dtype).reshape(B, C, gh, p, gw, p)
    patches = jnp.transpose(patches, (0, 2, 4, 1, 3, 5)).reshape(M, K)
    if Kp != K:
        patches = jnp.pad(patches, ((0, 0), (0, Kp - K)))

    # Conv2d weight (E, C, p, p) -> (K, E) bf16; bias -> (1, E) f32; pad lanes.
    w2d = weight.reshape(E, K).T.astype(compute_dtype)
    b2d = bias.astype(jnp.float32).reshape(1, E)
    if Kp != K or Ep != E:
        w2d = jnp.pad(w2d, ((0, Kp - K), (0, Ep - E)))   # zero rows/cols: no effect
    if Ep != E:
        b2d = jnp.pad(b2d, ((0, 0), (0, Ep - E)))

    cost = pl.CostEstimate(
        flops=2 * M * Kp * Ep,
        transcendentals=0,
        bytes_accessed=(M * Kp + Kp * Ep) * in_bytes + Ep * 4 + M * Ep * out_bytes,
    )

    out = pl.pallas_call(
        _patch_embed_kernel,
        out_shape=jax.ShapeDtypeStruct((M, Ep), out_dtype),
        grid=grid,
        in_specs=[
            pl.BlockSpec((TM, Kp), lambda i: (i, 0)),   # streamed patch rows
            pl.BlockSpec((Kp, Ep), lambda i: (0, 0)),   # resident weight
            pl.BlockSpec((1, Ep), lambda i: (0, 0)),    # resident bias
        ],
        out_specs=pl.BlockSpec((TM, Ep), lambda i: (i, 0)),
        compiler_params=pltpu.CompilerParams(
            dimension_semantics=("parallel",),          # shard M across v7x's 2 TCs
            vmem_limit_bytes=vmem_limit,                # generation-aware
            allow_input_fusion=[True, False, False],    # fuse cast/relayout/pad
        ),
        cost_estimate=cost,
    )(patches, w2d, b2d)

    # Only the lane pad on E (if any) needs slicing away; no M slice anymore.
    if Ep != E:
        out = out[:, :E]
    return out.reshape(B, num_patches, E)


if __name__ == "__main__":
    # Small shapes consistent with the module: img=16, patch=4, C=4, E=32, B=2.
    B, C, H, W = 2, 4, 16, 16
    p = 4
    E = 32

    key = jax.random.PRNGKey(0)
    kx, kw, kb = jax.random.split(key, 3)
    x = jax.random.normal(kx, (B, C, H, W), dtype=jnp.float32)
    weight = jax.random.normal(kw, (E, C, p, p), dtype=jnp.float32) * 0.02
    bias = jax.random.normal(kb, (E,), dtype=jnp.float32) * 0.02

    # jit so the cast/relayout/pad producer can actually fuse into the input DMA.
    fwd = jax.jit(functools.partial(patch_embed, patch_size=p))
    out = jax.block_until_ready(fwd(x, weight, bias))

    # sanity check against a plain-JAX conv-as-matmul reference (f32)
    gh, gw = H // p, W // p
    ref = x.reshape(B, C, gh, p, gw, p).transpose(0, 2, 4, 1, 3, 5)
    ref = ref.reshape(B, gh * gw, C * p * p) @ weight.reshape(E, -1).T + bias
    assert out.shape == (B, gh * gw, E)
    assert jnp.allclose(out.astype(jnp.float32), ref, atol=3e-2, rtol=3e-2)  # bf16 tol

    print("KERNEL_OK")
</pallas_src>

<mosaic_0001>
module attributes {stable_mosaic.version = 11 : i64} {
  func.func @_patch_embed_kernel(%arg0: i32, %arg1: memref<32x128xbf16, #tpu.memory_space<vmem>>, %arg2: memref<128x128xbf16, #tpu.memory_space<vmem>>, %arg3: memref<1x128xf32, #tpu.memory_space<vmem>>, %arg4: memref<32x128xbf16, #tpu.memory_space<vmem>>) attributes {dimension_semantics = [#tpu.dimension_semantics<parallel>], iteration_bounds = array<i64: 1>, scalar_prefetch = 0 : i64, scratch_operands = 0 : i64, tpu.core_type = #tpu.core_type<tc>, window_params = [{transform_indices = @transform_0, window_bounds = array<i64: 32, 128>}, {pipeline_mode = #tpu.pipeline_mode<synchronous>, transform_indices = @transform_1, window_bounds = array<i64: 128, 128>}, {pipeline_mode = #tpu.pipeline_mode<synchronous>, transform_indices = @transform_2, window_bounds = array<i64: 1, 128>}, {transform_indices = @transform_3, window_bounds = array<i64: 32, 128>}]} {
    %c0 = arith.constant 0 : index
    %c0_0 = arith.constant 0 : index
    %0 = vector.load %arg1[%c0, %c0_0] : memref<32x128xbf16, #tpu.memory_space<vmem>>, vector<32x128xbf16>
    %c0_1 = arith.constant 0 : index
    %c0_2 = arith.constant 0 : index
    %1 = vector.load %arg2[%c0_1, %c0_2] : memref<128x128xbf16, #tpu.memory_space<vmem>>, vector<128x128xbf16>
    %cst = arith.constant dense<0.000000e+00> : vector<32x128xf32>
    %2 = tpu.matmul %0, %1, %cst {dimension_numbers = #tpu.dot_dimension_numbers<[1], [0], [0], [1], [0, 0, 1, 1], [], []>} : vector<32x128xbf16>, vector<128x128xbf16>, vector<32x128xf32> -> vector<32x128xf32>
    %c0_3 = arith.constant 0 : index
    %c0_4 = arith.constant 0 : index
    %3 = vector.load %arg3[%c0_3, %c0_4] : memref<1x128xf32, #tpu.memory_space<vmem>>, vector<1x128xf32>
    %4 = vector.broadcast %3 : vector<1x128xf32> to vector<32x128xf32>
    %5 = arith.addf %2, %4 : vector<32x128xf32>
    %6 = arith.truncf %5 : vector<32x128xf32> to vector<32x128xbf16>
    %c0_5 = arith.constant 0 : index
    %c0_6 = arith.constant 0 : index
    %7 = vector.load %arg4[%c0_5, %c0_6] : memref<32x128xbf16, #tpu.memory_space<vmem>>, vector<32x128xbf16>
    tpu.vector_store %arg4[%c0_5, %c0_6], %6 {strides = array<i32>} : memref<32x128xbf16, #tpu.memory_space<vmem>>, vector<32x128xbf16>,
    return
  }
  func.func @transform_0(%arg0: i32) -> (i32, i32) {
    %c0_i32 = arith.constant 0 : i32
    %c0_i32_0 = arith.constant 0 : i32
    return %arg0, %c0_i32 : i32, i32
  }
  func.func @transform_1(%arg0: i32) -> (i32, i32) {
    %c0_i32 = arith.constant 0 : i32
    %c0_i32_0 = arith.constant 0 : i32
    %c0_i32_1 = arith.constant 0 : i32
    return %c0_i32, %c0_i32_0 : i32, i32
  }
  func.func @transform_2(%arg0: i32) -> (i32, i32) {
    %c0_i32 = arith.constant 0 : i32
    %c0_i32_0 = arith.constant 0 : i32
    %c0_i32_1 = arith.constant 0 : i32
    return %c0_i32, %c0_i32_0 : i32, i32
  }
  func.func @transform_3(%arg0: i32) -> (i32, i32) {
    %c0_i32 = arith.constant 0 : i32
    %c0_i32_0 = arith.constant 0 : i32
    return %arg0, %c0_i32 : i32, i32
  }
}

</mosaic_0001>

<bundles_post_ra>
// kernel: patch_embed.2
= control target key start
LH: loop header
LB: loop body
LE: loop exit
PB: predicated region body
PF: predicated region fallthrough
CT: control target
= control target key end

     0   :  { %s458_s0 = inlined_call_operand.vmem [shape: bf16[128,128], index: 0, kind: input, shape index: {}]   ;;  %s459_s1 = inlined_call_operand.vmem [shape: f32[1,128], index: 1, kind: input, shape index: {}]   ;;  %s460_s2 = inlined_call_operand.vmem [shape: bf16[32,64], index: 2, kind: input, shape index: {}]   ;;  %s461_s3 = inlined_call_operand.<no memory space> [shape: bf16[], index: 3, kind: input, shape index: {}]   ;;  %s462_s4 = inlined_call_operand.hbm [shape: bf16[32,128], index: 4, kind: output, shape index: {}]  }
   0x1   :  { %v9_v0 = vstv %s461_s3 }
   0x2   :  { %v10_v1 = vunpack.i.l.bf16 %v9_v0 }
   0x3   :  { %v347_v2 = vld [vmem:[%s458_s0] sm:$0xff]   ;;  %v33_v3 = vlaneseq  ;;  %v348_v4 = vld [vmem:[%s458_s0 + $0x8] sm:$0xff]   ;;  %v349_v5 = vld [vmem:[%s458_s0 + $0x10] sm:$0xff]  }
   0x4   :  { %323 = vmatprep.subr.bf16.mxu0 %v347_v2  ;;  %v350_v7 = vld [vmem:[%s458_s0 + $0x18] sm:$0xff]   ;;  %v30_v8 = vld [vmem:[%s460_s2] sm:$0xff]   ;;  %v281_v9 = vld [vmem:[%s460_s2 + $0x8] sm:$0xff]  }
   0x5   :  { %324 = vmatpush3.bf16.msra.mxu0 %v347_v2  ;;  %v34_v6 = vand.u32 127, %v33_v3 }
   0x6   :  { %325 = vmatprep.subr.bf16.mxu0 %v348_v4 }
   0x7   :  { %vm36_vm0 = vcmp.lt.s32.totalorder %v34_v6, 64 }
   0x9   :  { %326 = vmatpush3.bf16.msra.mxu0 %v348_v4 }
   0xa   :  { %327 = vmatprep.subr.bf16.mxu0 %v349_v5 }
   0xb   :  { %14 = vsyncpa [#allocation8], 0  ;;  %v31_v10 = vunpack.c.l.bf16 %v30_v8  ;;  %v52_v11 = vunpack.c.h.bf16 %v30_v8  ;;  %v74_v12 = vunpack.c.l.bf16 %v281_v9  ;;  %v96_v13 = vunpack.c.h.bf16 %v281_v9  ;;  %v351_v18 = vld [vmem:[%s458_s0 + $0x20] sm:$0xff]   ;;  %v352_v24 = vld [vmem:[%s458_s0 + $0x28] sm:$0xff]   ;;  %s382_s11 = smov [#allocation7]  }
   0xc   :  { %v381_v19 = vmov 0.0   ;;  %v353_v25 = vld [vmem:[%s458_s0 + $0x30] sm:$0xff]   ;;  %v354_v27 = vld [vmem:[%s458_s0 + $0x38] sm:$0xff]   ;;  %v283_v30 = vld [vmem:[%s459_s1] ss:$0 sm:$0xff]  ;;  %s269_s12 = sshll.u32 %s382_s11, 4  ;;  %s270_s12 = int_to_ptr.vmem [resolvable:$true] %s269_s12 }
   0xd   :  { %328 = vmatpush3.bf16.msra.mxu0 %v349_v5  ;;  %v37_v14 = vsel %vm36_vm0, %v31_v10, %v10_v1  ;;  %v58_v15 = vsel %vm36_vm0, %v52_v11, %v10_v1  ;;  %v80_v16 = vsel %vm36_vm0, %v74_v12, %v10_v1  ;;  %v102_v17 = vsel %vm36_vm0, %v96_v13, %v10_v1  ;;  %s357_s0 = scalar_lea.vmem %s270_s12, 256  ;;  %p362_p1 = scmp.lt.s32.totalorder %s270_s12, %s270_s12 }
   0xe   :  { %329 = vmatprep.subr.bf16.mxu0 %v350_v7  ;;  %v38_v20 = vpack.c.bf16 %v381_v19, %v37_v14  ;;  %v60_v21 = vpack.c.bf16 %v381_v19, %v58_v15  ;;  %v82_v22 = vpack.c.bf16 %v381_v19, %v80_v16  ;;  %v104_v23 = vpack.c.bf16 %v381_v19, %v102_v17  ;;  %p358_p0 = scmp.ne.s32.totalorder %s270_s12, %s357_s0  ;;  %p363_p2 = scmp.lt.s32.totalorder %s357_s0, %s357_s0 }
  0x10   :  { %40 = vst [vmem:[#allocation9] sm:$0xf] %v38_v20  ;;  %62 = vst [vmem:[#allocation9 + $0x4] sm:$0xf] %v60_v21  ;;  %p364_p3 = por %p363_p2, %p362_p1 }
  0x11   :  { %84 = vst [vmem:[#allocation9 + $0x8] sm:$0xf] %v82_v22  ;;  %106 = vst [vmem:[#allocation9 + $0xc] sm:$0xf] %v104_v23  ;;  %330 = vmatpush3.bf16.msra.mxu0 %v350_v7 }
  0x12   :  { %331 = vmatprep.subr.bf16.mxu0 %v351_v18  ;;  %p365_p4 = pnand %p364_p3, %p358_p0 }
  0x15   :  { %332 = vmatpush3.bf16.msra.mxu0 %v351_v18 }
  0x16   :  { %333 = vmatprep.subr.bf16.mxu0 %v352_v24 }
  0x17   :  { %v355_v26 = vld [vmem:[#allocation9] sm:$0xff]  }
  0x18   :  { %339 = vmatprep.mubr.bf16.mxu0 %v355_v26  ;;  %v356_v28 = vld [vmem:[#allocation9 + $0x8] sm:$0xff]  }
  0x19   :  { %334 = vmatpush3.bf16.msra.mxu0 %v352_v24 }
  0x1a   :  { %335 = vmatprep.subr.bf16.mxu0 %v353_v25 }
  0x1d   :  { %336 = vmatpush3.bf16.msra.mxu0 %v353_v25 }
  0x1e   :  { %337 = vmatprep.subr.bf16.mxu0 %v354_v27 }
  0x21   :  { %338 = vmatpush3.bf16.msra.mxu0 %v354_v27 }
  0x24   :  { %340 = vmatmul.mubr.bf16.vlgmr.msra.gmra.mrb[0].mxu0 %v356_v28 }
  0xf7   :  { %v341_v29 = vpop.f32.mrb[0].mxu0 }
  0xf8   :  { %v229_v31 = vpop.f32.mrb[1].mxu0  ;;  %v238_v33 = vadd.f32 %v341_v29, %v283_v30 }
  0xf9   :  { %v342_v32 = vpop.f32.mrb[2].mxu0  ;;  %v230_v36 = vadd.f32 %v283_v30, %v229_v31 }
  0xfa   :  { %v241_v34 = vadd.f32 %v342_v32, %v283_v30  ;;  %v232_v35 = vpop.f32.mrb[3].mxu0 }
  0xfb   :  { %v233_v37 = vadd.f32 %v283_v30, %v232_v35 }
  0xfc   :  { %v310_v38 = vpack.c.bf16 %v241_v34, %v238_v33 }
  0xfd   :  { %v305_v39 = vpack.c.bf16 %v233_v37, %v230_v36 }
  0xfe   :  { %312 = vst [vmem:[#allocation7 + $0x8] sm:$0xff] %v310_v38  }
  0xff   :  { %306 = vst [vmem:[#allocation7] sm:$0xff] %v305_v39  }
 0x100   :  { %368 = shalt.err (!%p365_p4)
}
 0x101   :  { %s369_s14 = scalar_lea.hbm %s462_s4, 256 }
 0x102   :  { %p370_p5 = scmp.ne.s32.totalorder %s462_s4, %s369_s14  ;;  %p373_p6 = scmp.lt.u32.totalorder %s369_s14, %s462_s4 }
 0x104   :  { %p375_p7 = pnand %p373_p6, %p370_p5 }
 0x106   :  { %378 = shalt.err (!%p375_p7)
}
 0x107   :  { %s383_s19 = smov 64   ;;  %s384_s20 = smov 4  }
 0x108   :  { %275 = dma.vmem_to_hbm [thread:$0]  %s270_s12, 256, %s462_s4, [#allocation8], %s383_s19, %s383_s19, %s384_s20  }
 0x109   :  { %379 = dma.done.wait [#allocation8], 256  }
 0x10a   :  { %380 = vsyncadd [#allocation8], 4294967040 }
 0x10b   :  { %279 = vsyncpa [#allocation8], 1 }

</bundles_post_ra>
